<compile_context>
chip_gen: v7x
topology: tpu7x:2x2x1
jax: 0.10.0
libtpu: 0.0.40
codegen_flags: <defaults>
</compile_context>

<pallas_src>
import jax
import jax.numpy as jnp
from jax.experimental import pallas as pl
from jax.experimental.pallas import tpu as pltpu


_NEG_LARGE = -1e30       # finite "-inf": exp underflows to 0 and 0 * (-1e30) == -0.0 (no NaN)
_TM_MAX = 512            # mem-bound sweet spot (~85% of HBM roofline on v6e measurements)
_PALLAS_MIN_BATCH = 256  # below this, plain XLA dot + log_softmax wins on wall clock


def _round_up(x, m):
    return (x + m - 1) // m * m


def _categorical_head_kernel(x_ref, w_ref, b_ref, logits_ref, logp_ref):
    # x: (tm, K) f32, w: (K, Np) f32, b: (1, Np) f32
    x = x_ref[...]
    w = w_ref[...]
    b = b_ref[...]

    # MXU matmul, f32 accumulate; bias add + epilogue stay in f32 (v5e-safe).
    logits = jnp.dot(x, w, preferred_element_type=jnp.float32) + b
    logits_ref[...] = logits

    # Fused log-softmax.  Padded lanes have logit = -1e30, so exp() == 0 and they drop
    # out of the row reductions; padded rows (zero input) are all-bias and harmless.
    m = jnp.max(logits, axis=-1, keepdims=True)      # XLU row reduce
    e = jnp.exp(logits - m)                          # EUP
    s = jnp.sum(e, axis=-1, keepdims=True)           # XLU row reduce, s >= 1
    logp_ref[...] = logits - (m + jnp.log(s))        # exact (no approx reciprocal)


def categorical_head_padded(x, weight_t, bias):
    """Hot path.  Returns padded (Bp, Np) f32 arrays (logits, log_probs).

    Rows >= B come from zero-padded inputs; lanes >= N carry logits == -1e30 and
    log_probs ~ -1e30 (so exp(log_probs) == 0 exactly).  Consumers can gather /
    reduce / sample from the padded arrays directly -- no slicing copies needed.
    """
    B, K = x.shape
    Kw, N = weight_t.shape
    assert Kw == K
    Np = _round_up(N, 128)

    Bp = _round_up(max(B, 8), 8)
    if Bp >= 16:
        # Big tiles amortize the ~0.35us/step overhead; cap at ~Bp/2 so the
        # "parallel" axis has >= 2 steps (v7x megacore sharding).
        tm = min(_TM_MAX, _round_up(Bp // 2, 8))
        Bp = _round_up(Bp, tm)
    else:
        tm = Bp

    # K is NOT padded: block last dim == full array dim (32) is legal, and 32 is a
    # valid sublane multiple for the weight block's second-to-last dim.
    x_p = x.astype(jnp.float32)
    if Bp != B:
        x_p = jnp.zeros((Bp, K), jnp.float32).at[:B].set(x_p)
    w_p = jnp.zeros((K, Np), jnp.float32).at[:, :N].set(weight_t.astype(jnp.float32))
    # Padded output lanes get a huge negative bias so the fused softmax ignores them.
    b_p = jnp.full((1, Np), _NEG_LARGE, jnp.float32).at[:, :N].set(
        bias.astype(jnp.float32).reshape(1, N))

    grid = (Bp // tm,)
    out_shape = (jax.ShapeDtypeStruct((Bp, Np), jnp.float32),
                 jax.ShapeDtypeStruct((Bp, Np), jnp.float32))

    logits_p, logp_p = pl.pallas_call(
        _categorical_head_kernel,
        out_shape=out_shape,
        grid_spec=pltpu.PrefetchScalarGridSpec(
            num_scalar_prefetch=0,
            grid=grid,
            in_specs=[
                pl.BlockSpec((tm, K), lambda i: (i, 0)),   # K kept natural (no pad)
                pl.BlockSpec((K, Np), lambda i: (0, 0)),   # tiny, re-used every step
                pl.BlockSpec((1, Np), lambda i: (0, 0)),
            ],
            out_specs=[
                pl.BlockSpec((tm, Np), lambda i: (i, 0)),
                pl.BlockSpec((tm, Np), lambda i: (i, 0)),
            ],
        ),
        compiler_params=pltpu.CompilerParams(
            # Independent M tiles -> shardable across v7x's 2 TensorCores.
            dimension_semantics=("parallel",),
        ),
    )(x_p, w_p, b_p)

    return logits_p, logp_p


def categorical_head(x, weight_t, bias, use_pallas=None):
    """Convenience API returning (logits, log_probs) at the logical (B, N) shape.

    For tiny batches a fused XLA dot + log_softmax beats any kernel, so dispatch on
    batch size unless `use_pallas` is forced.  Hot-path consumers that care about
    wall clock should call `categorical_head_padded` and use the padded arrays.
    """
    B, _ = x.shape
    N = weight_t.shape[1]
    if use_pallas is None:
        use_pallas = B >= _PALLAS_MIN_BATCH
    if not use_pallas:
        logits = jnp.dot(x, weight_t) + bias[None, :]
        return logits, jax.nn.log_softmax(logits, axis=-1)
    logits_p, logp_p = categorical_head_padded(x, weight_t, bias)
    # Slice kept only for API parity with the unpadded interface.
    return logits_p[:B, :N], logp_p[:B, :N]


def categorical_forward(x, weight_t, bias, use_pallas=None):
    """Forward of the Categorical module (a single nn.Linear producing action logits)."""
    logits, _ = categorical_head(x, weight_t, bias, use_pallas=use_pallas)
    return logits


def init_categorical_params(key, num_inputs, num_outputs):
    # Deterministic init mimicking nn.Linear default: U(-1/sqrt(fan_in), 1/sqrt(fan_in)).
    kw, kb = jax.random.split(key)
    bound = 1.0 / jnp.sqrt(jnp.float32(num_inputs))
    # PyTorch weight is (num_outputs, num_inputs); store transposed for the kernel.
    weight = jax.random.uniform(
        kw, (num_outputs, num_inputs), jnp.float32, -bound, bound
    )
    bias = jax.random.uniform(kb, (num_outputs,), jnp.float32, -bound, bound)
    return weight.T, bias


if __name__ == "__main__":
    key = jax.random.PRNGKey(0)
    k_x, k_x2, k_p = jax.random.split(key, 3)

    num_inputs = 32   # hidden size feeding the policy head
    num_outputs = 8   # action-space size
    weight_t, bias = init_categorical_params(k_p, num_inputs, num_outputs)

    # --- tiny batch (module's native use case); Pallas path exercised explicitly ---
    batch = 2
    x = jax.random.normal(k_x, (batch, num_inputs), jnp.float32)

    head_padded = jax.jit(categorical_head_padded)
    logits_p, logp_p = head_padded(x, weight_t, bias)
    jax.block_until_ready((logits_p, logp_p))

    ref_logits = jnp.dot(x, weight_t, precision=jax.lax.Precision.HIGHEST) + bias[None, :]
    ref_logp = jax.nn.log_softmax(ref_logits, axis=-1)
    ref_probs = jax.nn.softmax(ref_logits, axis=-1)

    logits = logits_p[:batch, :num_outputs]
    logp = logp_p[:batch, :num_outputs]
    probs = jnp.exp(logp)

    assert logits.shape == (batch, num_outputs)
    assert jnp.allclose(logits, ref_logits, atol=1e-2, rtol=1e-2)
    assert jnp.allclose(logp, ref_logp, atol=1e-2, rtol=1e-2)
    assert jnp.allclose(probs, ref_probs, atol=1e-2, rtol=1e-2)
    # Exact epilogue: probability rows sum to 1 to f32 accuracy.
    assert jnp.allclose(probs.sum(-1), 1.0, atol=1e-5)

    # Padded outputs are directly consumable: padded lanes have probability exactly 0,
    # so entropy over all Np lanes equals entropy over the logical N lanes.
    probs_p = jnp.exp(logp_p)
    assert bool(jnp.all(probs_p[:, num_outputs:] == 0.0))
    entropy = -(probs_p * logp_p).sum(-1)[:batch]
    ref_entropy = -(ref_probs * ref_logp).sum(-1)
    assert jnp.allclose(entropy, ref_entropy, atol=1e-2, rtol=1e-2)

    # Chosen-action log-prob gather on the padded array (actions < num_outputs).
    actions = jnp.array([[1], [6]], jnp.int32)
    a_logp = jnp.take_along_axis(logp_p[:batch], actions, axis=1)
    ref_a_logp = jnp.take_along_axis(ref_logp, actions, axis=1)
    assert jnp.allclose(a_logp, ref_a_logp, atol=1e-2, rtol=1e-2)

    # --- mid-size batch: exercises the multi-step "parallel" grid (2 steps, tm=136) ---
    batch2 = 272
    x2 = jax.random.normal(k_x2, (batch2, num_inputs), jnp.float32)
    logits2_p, logp2_p = head_padded(x2, weight_t, bias)
    jax.block_until_ready((logits2_p, logp2_p))
    ref_logits2 = jnp.dot(x2, weight_t, precision=jax.lax.Precision.HIGHEST) + bias[None, :]
    ref_logp2 = jax.nn.log_softmax(ref_logits2, axis=-1)
    assert jnp.allclose(logits2_p[:batch2, :num_outputs], ref_logits2, atol=1e-2, rtol=1e-2)
    assert jnp.allclose(logp2_p[:batch2, :num_outputs], ref_logp2, atol=1e-2, rtol=1e-2)

    # --- auto dispatch: tiny batch takes the plain-XLA path, same semantics ---
    logits_auto, logp_auto = jax.jit(categorical_head)(x, weight_t, bias)
    assert jnp.allclose(logits_auto, ref_logits, atol=1e-2, rtol=1e-2)
    assert jnp.allclose(logp_auto, ref_logp, atol=1e-2, rtol=1e-2)

    # TODO(synk): multinomial action sampling (sample()) stays in plain JAX
    # (jax.random.categorical on the padded logits is safe: padded lanes are -1e30);
    # deterministic action = argmax over padded logits likewise works unchanged.
    print("KERNEL_OK")
</pallas_src>

<mosaic_0001>
module attributes {stable_mosaic.version = 11 : i64} {
  func.func @_categorical_head_kernel(%arg0: i32, %arg1: memref<8x32xf32, #tpu.memory_space<vmem>>, %arg2: memref<32x128xf32, #tpu.memory_space<vmem>>, %arg3: memref<1x128xf32, #tpu.memory_space<vmem>>, %arg4: memref<8x128xf32, #tpu.memory_space<vmem>>, %arg5: memref<8x128xf32, #tpu.memory_space<vmem>>) attributes {dimension_semantics = [#tpu.dimension_semantics<parallel>], iteration_bounds = array<i64: 1>, scalar_prefetch = 0 : i64, scratch_operands = 0 : i64, tpu.core_type = #tpu.core_type<tc>, window_params = [{transform_indices = @transform_0, window_bounds = array<i64: 8, 32>}, {pipeline_mode = #tpu.pipeline_mode<synchronous>, transform_indices = @transform_1, window_bounds = array<i64: 32, 128>}, {pipeline_mode = #tpu.pipeline_mode<synchronous>, transform_indices = @transform_2, window_bounds = array<i64: 1, 128>}, {transform_indices = @transform_3, window_bounds = array<i64: 8, 128>}, {transform_indices = @transform_4, window_bounds = array<i64: 8, 128>}]} {
    %c0 = arith.constant 0 : index
    %c0_0 = arith.constant 0 : index
    %0 = vector.load %arg1[%c0, %c0_0] : memref<8x32xf32, #tpu.memory_space<vmem>>, vector<8x32xf32>
    %c0_1 = arith.constant 0 : index
    %c0_2 = arith.constant 0 : index
    %1 = vector.load %arg2[%c0_1, %c0_2] : memref<32x128xf32, #tpu.memory_space<vmem>>, vector<32x128xf32>
    %c0_3 = arith.constant 0 : index
    %c0_4 = arith.constant 0 : index
    %2 = vector.load %arg3[%c0_3, %c0_4] : memref<1x128xf32, #tpu.memory_space<vmem>>, vector<1x128xf32>
    %cst = arith.constant dense<0.000000e+00> : vector<8x128xf32>
    %3 = tpu.matmul %0, %1, %cst {dimension_numbers = #tpu.dot_dimension_numbers<[1], [0], [0], [1], [0, 0, 1, 1], [], []>} : vector<8x32xf32>, vector<32x128xf32>, vector<8x128xf32> -> vector<8x128xf32>
    %4 = vector.broadcast %2 : vector<1x128xf32> to vector<8x128xf32>
    %5 = arith.addf %3, %4 : vector<8x128xf32>
    %c0_5 = arith.constant 0 : index
    %c0_6 = arith.constant 0 : index
    %6 = vector.load %arg4[%c0_5, %c0_6] : memref<8x128xf32, #tpu.memory_space<vmem>>, vector<8x128xf32>
    tpu.vector_store %arg4[%c0_5, %c0_6], %5 {strides = array<i32>} : memref<8x128xf32, #tpu.memory_space<vmem>>, vector<8x128xf32>,
    %cst_7 = arith.constant dense<0xFF800000> : vector<8xf32>
    %7 = vector.multi_reduction <maximumf>, %5, %cst_7 [1] : vector<8x128xf32> to vector<8xf32>
    %8 = vector.shape_cast %7 : vector<8xf32> to vector<8x1xf32>
    %9 = vector.broadcast %8 : vector<8x1xf32> to vector<8x128xf32>
    %10 = arith.subf %5, %9 : vector<8x128xf32>
    %11 = math.exp %10 : vector<8x128xf32>
    %cst_8 = arith.constant dense<0.000000e+00> : vector<8xf32>
    %12 = vector.multi_reduction <add>, %11, %cst_8 [1] : vector<8x128xf32> to vector<8xf32>
    %13 = vector.shape_cast %12 : vector<8xf32> to vector<8x1xf32>
    %14 = math.log %13 : vector<8x1xf32>
    %15 = arith.addf %8, %14 : vector<8x1xf32>
    %16 = vector.broadcast %15 : vector<8x1xf32> to vector<8x128xf32>
    %17 = arith.subf %5, %16 : vector<8x128xf32>
    %c0_9 = arith.constant 0 : index
    %c0_10 = arith.constant 0 : index
    %18 = vector.load %arg5[%c0_9, %c0_10] : memref<8x128xf32, #tpu.memory_space<vmem>>, vector<8x128xf32>
    tpu.vector_store %arg5[%c0_9, %c0_10], %17 {strides = array<i32>} : memref<8x128xf32, #tpu.memory_space<vmem>>, vector<8x128xf32>,
    return
  }
  func.func @transform_0(%arg0: i32) -> (i32, i32) {
    %c0_i32 = arith.constant 0 : i32
    %c0_i32_0 = arith.constant 0 : i32
    return %arg0, %c0_i32 : i32, i32
  }
  func.func @transform_1(%arg0: i32) -> (i32, i32) {
    %c0_i32 = arith.constant 0 : i32
    %c0_i32_0 = arith.constant 0 : i32
    %c0_i32_1 = arith.constant 0 : i32
    return %c0_i32, %c0_i32_0 : i32, i32
  }
  func.func @transform_2(%arg0: i32) -> (i32, i32) {
    %c0_i32 = arith.constant 0 : i32
    %c0_i32_0 = arith.constant 0 : i32
    %c0_i32_1 = arith.constant 0 : i32
    return %c0_i32, %c0_i32_0 : i32, i32
  }
  func.func @transform_3(%arg0: i32) -> (i32, i32) {
    %c0_i32 = arith.constant 0 : i32
    %c0_i32_0 = arith.constant 0 : i32
    return %arg0, %c0_i32 : i32, i32
  }
  func.func @transform_4(%arg0: i32) -> (i32, i32) {
    %c0_i32 = arith.constant 0 : i32
    %c0_i32_0 = arith.constant 0 : i32
    return %arg0, %c0_i32 : i32, i32
  }
}

</mosaic_0001>

<bundles_post_ra>
// kernel: categorical_head_padded.1
= control target key start
LH: loop header
LB: loop body
LE: loop exit
PB: predicated region body
PF: predicated region fallthrough
CT: control target
= control target key end

     0   :  { %10 = vsyncpa [#allocation3], 0  ;;  %v226_v3 = vmov 0.0|0.0   ;;  %vm227_vm0 = vmmov 0   ;;  %v228_v6 = vmov 0.0   ;;  %s298_s0 = inlined_call_operand.vmem [shape: f32[8,32], index: 0, kind: input, shape index: {}]   ;;  %s299_s1 = inlined_call_operand.vmem [shape: f32[32,128], index: 1, kind: input, shape index: {}]   ;;  %s300_s2 = inlined_call_operand.vmem [shape: f32[1,128], index: 2, kind: input, shape index: {}]   ;;  %s301_s3 = inlined_call_operand.hbm [shape: f32[8,128], index: 3, kind: output, shape index: {0}]   ;;  %s302_s4 = inlined_call_operand.hbm [shape: f32[8,128], index: 4, kind: output, shape index: {1}]  }
   0x1   :  { %v19_v0 = vld [vmem:[%s299_s1] sm:$0xff]  ;;  %v20_v1 = vld [vmem:[%s299_s1 + $0x8] sm:$0xff]  ;;  %v21_v2 = vld [vmem:[%s299_s1 + $0x10] sm:$0xff]  ;;  %163 = vmatprep.subr.bf16.mxu0 %v226_v3  ;;  %160 = vmatprep.mubr.msk.f32.mxu0 %vm227_vm0, %v228_v6 }
   0x2   :  { %v164_v4 = vpack.c.bf16 %v20_v1, %v19_v0  ;;  %v22_v5 = vld [vmem:[%s299_s1 + $0x18] sm:$0xff] }
   0x3   :  { %11 = vsyncpa [#allocation5], 0  ;;  %v167_v7 = vpack.c.bf16 %v22_v5, %v21_v2  ;;  %v18_v8 = vld [vmem:[%s298_s0] sm:$0xff]  ;;  %vm30_vm1 = vcmask 261120   ;;  %s229_s1 = smov [#allocation2]  }
   0x4   :  { %165 = vmatpush3.bf16.msra.mxu0 %v164_v4  ;;  %v145_v9 = vld [vmem:[%s300_s2] ss:$0 sm:$0xff]  ;;  %s123_s27 = sshll.u32 %s229_s1, 4  ;;  %s124_s27 = int_to_ptr.vmem [resolvable:$true] %s123_s27 }
   0x5   :  { %166 = vmatprep.subr.bf16.mxu0 %v226_v3  ;;  %s178_s0 = scalar_lea.vmem %s124_s27, 128  ;;  %p183_p1 = scmp.lt.s32.totalorder %s124_s27, %s124_s27 }
   0x6   :  { %p179_p0 = scmp.ne.s32.totalorder %s124_s27, %s178_s0  ;;  %p184_p2 = scmp.lt.s32.totalorder %s178_s0, %s178_s0 }
   0x8   :  { %168 = vmatpush3.bf16.msra.mxu0 %v167_v7  ;;  %p185_p3 = por %p184_p2, %p183_p1 }
   0xa   :  { %p186_p4 = pnand %p185_p3, %p179_p0 }
   0xb   :  { %161 = vmatmul.mubr.msk.f32.vlgmr.msra.gmra.mrb[0].mxu0 %vm30_vm1, %v18_v8 }
  0xde   :  { %v100_v10 = vpop.f32.mrb[0].mxu0 }
  0xdf   :  { %v101_v11 = vadd.f32 %v145_v9, %v100_v10  ;;  %v162_v12 = vpop.f32.mrb[1].mxu0 }
  0xe1   :  { %104 = vst [vmem:[#allocation2] sm:$0xff] %v101_v11  ;;  %105 = vmax.xlane.f32.xlu0 %v101_v11 }
 0x16e   :  { %v106_v13 = vpop.xlane.xlu0 %105 }
 0x16f   :  { %v107_v14 = vsub.f32 %v101_v11, %v106_v13 }
 0x171   :  { %v108_v15 = vmul.f32 1.442695, %v107_v14 }
 0x173   :  { %174 = vpow2.f32 %v108_v15 }
 0x17d   :  { %v175_v16 = vpop.eup %174 }
 0x17e   :  { %110 = vadd.xlane.f32.xlu0 %v175_v16 }
 0x17f   :  { %189 = shalt.err (!%p186_p4)
}
 0x180   :  { %s190_s29 = scalar_lea.hbm %s301_s3, 128 }
 0x181   :  { %p191_p5 = scmp.ne.s32.totalorder %s301_s3, %s190_s29  ;;  %p194_p6 = scmp.lt.u32.totalorder %s190_s29, %s301_s3 }
 0x183   :  { %p196_p7 = pnand %p194_p6, %p191_p5 }
 0x185   :  { %199 = shalt.err (!%p196_p7)
}
 0x186   :  { %126 = dma.vmem_to_hbm [thread:$0]  %s124_s27, 128, %s301_s3, [#allocation3]  }
 0x187   :  { %s230_s10 = smov [#allocation4]  }
 0x188   :  { %s133_s11 = sshll.u32 %s230_s10, 4  ;;  %s134_s11 = int_to_ptr.vmem [resolvable:$true] %s133_s11 }
 0x189   :  { %s200_s12 = scalar_lea.vmem %s134_s11, 128  ;;  %p205_p9 = scmp.lt.s32.totalorder %s134_s11, %s134_s11 }
 0x18a   :  { %p201_p8 = scmp.ne.s32.totalorder %s134_s11, %s200_s12  ;;  %p206_p10 = scmp.lt.s32.totalorder %s200_s12, %s200_s12 }
 0x18c   :  { %p207_p11 = por %p206_p10, %p205_p9 }
 0x18e   :  { %p208_p12 = pnand %p207_p11, %p201_p8 }
 0x20b   :  { %v111_v17 = vpop.xlane.xlu0 %110 }
 0x20c   :  { %176 = vlog2.f32 %v111_v17 }
 0x216   :  { %v177_v18 = vpop.eup %176 }
 0x217   :  { %v113_v19 = vmul.f32 0.6931472, %v177_v18 }
 0x219   :  { %v114_v20 = vadd.f32 %v113_v19, %v106_v13 }
 0x21b   :  { %v115_v21 = vsub.f32 %v101_v11, %v114_v20 }
 0x21d   :  { %116 = vst [vmem:[#allocation4] sm:$0xff] %v115_v21 }
 0x21e   :  { %211 = shalt.err (!%p208_p12)
}
 0x21f   :  { %s212_s3 = scalar_lea.hbm %s302_s4, 128 }
 0x220   :  { %p213_p13 = scmp.ne.s32.totalorder %s302_s4, %s212_s3  ;;  %p216_p0 = scmp.lt.u32.totalorder %s212_s3, %s302_s4 }
 0x222   :  { %p218_p1 = pnand %p216_p0, %p213_p13 }
 0x224   :  { %221 = shalt.err (!%p218_p1)
}
 0x225   :  { %136 = dma.vmem_to_hbm [thread:$0]  %s134_s11, 128, %s302_s4, [#allocation5]  }
 0x226   :  { %222 = dma.done.wait [#allocation3], 128  }
 0x227   :  { %223 = vsyncadd [#allocation3], 4294967168 }
 0x228   :  { %224 = dma.done.wait [#allocation5], 128  }
 0x229   :  { %225 = vsyncadd [#allocation5], 4294967168 }
 0x22a   :  { %143 = vsyncpa [#allocation3], 1 }
 0x22b   :  { %144 = vsyncpa [#allocation5], 1 }

</bundles_post_ra>
